<compile_context>
chip_gen: v6e
topology: v6e:2x2x1
jax: 0.10.0
libtpu: 0.0.40
codegen_flags: <defaults>
</compile_context>

<pallas_src>
import functools

import jax
import jax.numpy as jnp
from jax import lax
from jax.experimental import pallas as pl
from jax.experimental.pallas import tpu as pltpu

GAMMA = 2.0          # static; gamma == 2 is implemented as a plain square
ALPHA = 0.25
LANES = 128
MAX_TILE_ROWS = 2048  # 2048 x 128 f32 = 1 MiB per input block
ACC_ROWS = 8          # fixed small accumulator (one vreg tile)


def _detect_num_tensorcores():
    """Best-effort count of TensorCores one pallas_call can spread over."""
    try:
        kind = (jax.devices()[0].device_kind or "").lower()
    except Exception:
        return 1
    # Single-TensorCore chips: v5e / v6e (reported as "... lite" or "...e").
    if "lite" in kind or "v5e" in kind or "v6" in kind:
        return 1
    # Dual-TC / megacore-style chips: v4, v5p, v7x.
    if "v4" in kind or "v7" in kind or kind.strip().endswith("v5") or "v5p" in kind:
        return 2
    return 1


_NUM_TC = _detect_num_tensorcores()


def _focal_sum_kernel(x_ref, y_ref, out_ref, acc_ref, *,
                      rows, tile_rows, acc_rows, nb_total, nb_inner,
                      mask_rows, guard_blocks):
    i = pl.program_id(1)           # reduction axis
    p = pl.program_id(0)           # (optional) core-parallel axis

    @pl.when(i == 0)
    def _():
        acc_ref[...] = jnp.zeros_like(acc_ref)

    x = x_ref[...].astype(jnp.float32)
    y = y_ref[...].astype(jnp.float32)

    # Numerically-stable BCE-with-logits (== F.binary_cross_entropy_with_logits,
    # reduction='none'):  bce = max(x, 0) - x*y + log(1 + exp(-|x|))
    bce = jnp.maximum(x, 0.0) - x * y + jnp.log1p(jnp.exp(-jnp.abs(x)))
    pt = jnp.exp(-bce)
    one_m_pt = 1.0 - pt
    focal = ALPHA * one_m_pt * one_m_pt * bce   # gamma == 2 -> exact square (VALU)

    blk = p * nb_inner + i          # logical block id (scalar unit)

    if mask_rows:
        # Only compiled in when rows % tile_rows != 0: zero the sublane-rows
        # of the ragged trailing block (NaN-safe select, row-level only).
        valid = rows - blk * tile_rows
        row_id = lax.broadcasted_iota(jnp.int32, focal.shape, 0)
        focal = jnp.where(row_id < valid, focal, 0.0)

    if tile_rows == acc_rows:
        contrib = focal
    else:
        contrib = focal.reshape(tile_rows // acc_rows, acc_rows, LANES).sum(axis=0)

    if guard_blocks:
        # Drop phantom / duplicated blocks (clamped index_map) with a scalar
        # guard instead of elementwise masking.
        @pl.when(blk < nb_total)
        def _():
            acc_ref[...] += contrib
    else:
        acc_ref[...] += contrib

    @pl.when(i == pl.num_programs(1) - 1)
    def _():
        out_ref[...] = jnp.sum(acc_ref[...]).reshape(1, 1, 1)


def _focal_elems(x, y):
    """Plain-jnp focal term (used only for the <128-element ragged tail)."""
    x = x.astype(jnp.float32)
    y = y.astype(jnp.float32)
    bce = jnp.maximum(x, 0.0) - x * y + jnp.log1p(jnp.exp(-jnp.abs(x)))
    pt = jnp.exp(-bce)
    return ALPHA * (1.0 - pt) * (1.0 - pt) * bce


@jax.jit
def binary_focal_loss(logits, targets):
    """Pallas BinaryFocalLoss(gamma=2, alpha=0.25, use_logits=True) forward."""
    n_elems = logits.size
    x_flat = logits.reshape(-1)
    y_flat = targets.reshape(-1)     # native dtype; kernel upcasts on-chip

    rows = n_elems // LANES
    n_full = rows * LANES
    tail = n_elems - n_full

    total = jnp.float32(0.0)

    if tail:  # static: at most 127 elements, handled in the wrapper (no pad copy)
        total = total + jnp.sum(_focal_elems(x_flat[n_full:], y_flat[n_full:]))

    if rows > 0:  # static
        if tail:
            x2 = x_flat[:n_full].reshape(rows, LANES)
            y2 = y_flat[:n_full].reshape(rows, LANES)
        else:
            x2 = x_flat.reshape(rows, LANES)
            y2 = y_flat.reshape(rows, LANES)

        # Big blocks: full slab if it fits, otherwise MAX_TILE_ROWS-row tiles.
        tile_rows = rows if rows <= MAX_TILE_ROWS else MAX_TILE_ROWS
        nb_total = pl.cdiv(rows, tile_rows)

        # Only split across cores when the device actually has >1 TensorCore
        # and there is more than one block of work.
        num_parts = _NUM_TC if nb_total >= _NUM_TC else 1
        nb_inner = pl.cdiv(nb_total, num_parts)

        guard_blocks = (num_parts * nb_inner != nb_total)  # phantom blocks exist
        mask_rows = (rows % tile_rows != 0)                 # ragged trailing block
        acc_rows = ACC_ROWS if tile_rows % ACC_ROWS == 0 else tile_rows

        def in_map(p, i):
            # Clamp so phantom trailing blocks still map in-bounds; the scalar
            # pl.when guard in the kernel drops their contribution.
            return (jnp.minimum(p * nb_inner + i, nb_total - 1), 0)

        in_spec = pl.BlockSpec((tile_rows, LANES), in_map)

        kernel = functools.partial(
            _focal_sum_kernel,
            rows=rows, tile_rows=tile_rows, acc_rows=acc_rows,
            nb_total=nb_total, nb_inner=nb_inner,
            mask_rows=mask_rows, guard_blocks=guard_blocks)

        partials = pl.pallas_call(
            kernel,
            out_shape=jax.ShapeDtypeStruct((num_parts, 1, 1), jnp.float32),
            grid_spec=pltpu.PrefetchScalarGridSpec(
                num_scalar_prefetch=0,
                grid=(num_parts, nb_inner),
                in_specs=[in_spec, in_spec],
                out_specs=pl.BlockSpec((1, 1, 1), lambda p, i: (p, 0, 0)),
                scratch_shapes=[pltpu.VMEM((acc_rows, LANES), jnp.float32)],
            ),
            compiler_params=pltpu.CompilerParams(
                dimension_semantics=("parallel", "arbitrary")),
        )(x2, y2)

        total = total + jnp.sum(partials)

    return (total / n_elems).astype(jnp.float32)


def _reference(logits, targets):
    x = logits.astype(jnp.float32)
    y = targets.astype(jnp.float32)
    bce = jnp.maximum(x, 0.0) - x * y + jnp.log1p(jnp.exp(-jnp.abs(x)))
    pt = jnp.exp(-bce)
    return jnp.mean(ALPHA * (1.0 - pt) ** GAMMA * bce)


if __name__ == "__main__":
    key = jax.random.PRNGKey(0)
    k1, k2, k3, k4 = jax.random.split(key, 4)

    # NCHW segmentation-style shape: [2, 4, 16, 16]  (2048 elems = 16 lane-rows)
    logits = jax.random.normal(k1, (2, 4, 16, 16), dtype=jnp.float32)
    targets = (jax.random.uniform(k2, (2, 4, 16, 16)) > 0.5).astype(jnp.float32)

    out = binary_focal_loss(logits, targets)
    out = jax.block_until_ready(out)
    ref = _reference(logits, targets)
    assert jnp.allclose(out, ref, rtol=1e-5, atol=1e-5), (out, ref)

    # Ragged-size check: 2312 elems -> 18 full lane-rows + 8-element tail.
    logits2 = jax.random.normal(k3, (2, 4, 17, 17), dtype=jnp.float32)
    targets2 = (jax.random.uniform(k4, (2, 4, 17, 17)) > 0.5).astype(jnp.float32)
    out2 = jax.block_until_ready(binary_focal_loss(logits2, targets2))
    ref2 = _reference(logits2, targets2)
    assert jnp.allclose(out2, ref2, rtol=1e-5, atol=1e-5), (out2, ref2)

    print("KERNEL_OK")
</pallas_src>

<mosaic_0001>
module attributes {stable_mosaic.version = 11 : i64} {
  func.func @_focal_sum_kernel(%arg0: i32, %arg1: i32, %arg2: memref<16x128xf32, #tpu.memory_space<vmem>>, %arg3: memref<16x128xf32, #tpu.memory_space<vmem>>, %arg4: memref<1x1x1xf32, #tpu.memory_space<vmem>>, %arg5: memref<8x128xf32, #tpu.memory_space<vmem>>) attributes {dimension_semantics = [#tpu.dimension_semantics<parallel>, #tpu.dimension_semantics<arbitrary>], iteration_bounds = array<i64: 1, 1>, scalar_prefetch = 0 : i64, scratch_operands = 1 : i64, tpu.core_type = #tpu.core_type<tc>, window_params = [{transform_indices = @transform_0, window_bounds = array<i64: 16, 128>}, {transform_indices = @transform_1, window_bounds = array<i64: 16, 128>}, {transform_indices = @transform_2, window_bounds = array<i64: 1, 1, 1>}]} {
    %c0_i32 = arith.constant 0 : i32
    %0 = arith.cmpi eq, %arg1, %c0_i32 : i32
    %1 = arith.extui %0 : i1 to i32
    %c0_i32_0 = arith.constant 0 : i32
    %2 = arith.cmpi ne, %1, %c0_i32_0 : i32
    scf.if %2 {
      %cst_15 = arith.constant 0.000000e+00 : f32
      %32 = vector.broadcast %cst_15 : f32 to vector<8x128xf32>
      %c0_16 = arith.constant 0 : index
      %c0_17 = arith.constant 0 : index
      %33 = vector.load %arg5[%c0_16, %c0_17] : memref<8x128xf32, #tpu.memory_space<vmem>>, vector<8x128xf32>
      tpu.vector_store %arg5[%c0_16, %c0_17], %32 {strides = array<i32>} : memref<8x128xf32, #tpu.memory_space<vmem>>, vector<8x128xf32>,
    } else {
    }
    %c0 = arith.constant 0 : index
    %c0_1 = arith.constant 0 : index
    %3 = vector.load %arg2[%c0, %c0_1] : memref<16x128xf32, #tpu.memory_space<vmem>>, vector<16x128xf32>
    %c0_2 = arith.constant 0 : index
    %c0_3 = arith.constant 0 : index
    %4 = vector.load %arg3[%c0_2, %c0_3] : memref<16x128xf32, #tpu.memory_space<vmem>>, vector<16x128xf32>
    %cst = arith.constant 0.000000e+00 : f32
    %5 = vector.broadcast %cst : f32 to vector<16x128xf32>
    %6 = arith.maximumf %3, %5 : vector<16x128xf32>
    %7 = arith.mulf %3, %4 : vector<16x128xf32>
    %8 = arith.subf %6, %7 : vector<16x128xf32>
    %9 = math.absf %3 : vector<16x128xf32>
    %cst_4 = arith.constant 0.000000e+00 : f32
    %10 = vector.broadcast %cst_4 : f32 to vector<16x128xf32>
    %11 = arith.subf %10, %9 : vector<16x128xf32>
    %12 = math.exp %11 : vector<16x128xf32>
    %13 = math.log1p %12 : vector<16x128xf32>
    %14 = arith.addf %8, %13 : vector<16x128xf32>
    %cst_5 = arith.constant 0.000000e+00 : f32
    %15 = vector.broadcast %cst_5 : f32 to vector<16x128xf32>
    %16 = arith.subf %15, %14 : vector<16x128xf32>
    %17 = math.exp %16 : vector<16x128xf32>
    %cst_6 = arith.constant 1.000000e+00 : f32
    %18 = vector.broadcast %cst_6 : f32 to vector<16x128xf32>
    %19 = arith.subf %18, %17 : vector<16x128xf32>
    %cst_7 = arith.constant 2.500000e-01 : f32
    %20 = vector.broadcast %cst_7 : f32 to vector<16x128xf32>
    %21 = arith.mulf %20, %19 : vector<16x128xf32>
    %22 = arith.mulf %21, %19 : vector<16x128xf32>
    %23 = arith.mulf %22, %14 : vector<16x128xf32>
    %24 = vector.shape_cast %23 : vector<16x128xf32> to vector<2x8x128xf32>
    %cst_8 = arith.constant dense<0.000000e+00> : vector<8x128xf32>
    %25 = vector.multi_reduction <add>, %24, %cst_8 [0] : vector<2x8x128xf32> to vector<8x128xf32>
    %c0_9 = arith.constant 0 : index
    %c0_10 = arith.constant 0 : index
    %26 = vector.load %arg5[%c0_9, %c0_10] : memref<8x128xf32, #tpu.memory_space<vmem>>, vector<8x128xf32>
    %27 = arith.addf %26, %25 : vector<8x128xf32>
    %c0_11 = arith.constant 0 : index
    %c0_12 = arith.constant 0 : index
    %28 = vector.load %arg5[%c0_11, %c0_12] : memref<8x128xf32, #tpu.memory_space<vmem>>, vector<8x128xf32>
    tpu.vector_store %arg5[%c0_11, %c0_12], %27 {strides = array<i32>} : memref<8x128xf32, #tpu.memory_space<vmem>>, vector<8x128xf32>,
    %c0_i32_13 = arith.constant 0 : i32
    %29 = arith.cmpi eq, %arg1, %c0_i32_13 : i32
    %30 = arith.extui %29 : i1 to i32
    %c0_i32_14 = arith.constant 0 : i32
    %31 = arith.cmpi ne, %30, %c0_i32_14 : i32
    scf.if %31 {
      %c0_15 = arith.constant 0 : index
      %c0_16 = arith.constant 0 : index
      %32 = vector.load %arg5[%c0_15, %c0_16] : memref<8x128xf32, #tpu.memory_space<vmem>>, vector<8x128xf32>
      %33 = vector.shape_cast %32 : vector<8x128xf32> to vector<1x8x128xf32>
      %cst_17 = arith.constant dense<0.000000e+00> : vector<1xf32>
      %34 = vector.multi_reduction <add>, %33, %cst_17 [1, 2] : vector<1x8x128xf32> to vector<1xf32>
      %35 = vector.shape_cast %34 : vector<1xf32> to vector<1x1x1xf32>
      %36 = vector.extract %35[0, 0, 0] : f32 from vector<1x1x1xf32>
      %37 = vector.broadcast %36 : f32 to vector<1x1x1xf32>
      %c0_18 = arith.constant 0 : index
      %c0_19 = arith.constant 0 : index
      %c0_20 = arith.constant 0 : index
      %38 = vector.load %arg4[%c0_18, %c0_19, %c0_20] : memref<1x1x1xf32, #tpu.memory_space<vmem>>, vector<1x1x1xf32>
      tpu.vector_store %arg4[%c0_18, %c0_19, %c0_20], %37 {strides = array<i32>} : memref<1x1x1xf32, #tpu.memory_space<vmem>>, vector<1x1x1xf32>,
    } else {
    }
    return
  }
  func.func @transform_0(%arg0: i32, %arg1: i32) -> (i32, i32) {
    %c1_i32 = arith.constant 1 : i32
    %0 = arith.muli %arg0, %c1_i32 : i32
    %1 = arith.addi %0, %arg1 : i32
    %c0_i32 = arith.constant 0 : i32
    %2 = arith.minsi %1, %c0_i32 : i32
    %c0_i32_0 = arith.constant 0 : i32
    %c0_i32_1 = arith.constant 0 : i32
    return %2, %c0_i32_0 : i32, i32
  }
  func.func @transform_1(%arg0: i32, %arg1: i32) -> (i32, i32) {
    %c1_i32 = arith.constant 1 : i32
    %0 = arith.muli %arg0, %c1_i32 : i32
    %1 = arith.addi %0, %arg1 : i32
    %c0_i32 = arith.constant 0 : i32
    %2 = arith.minsi %1, %c0_i32 : i32
    %c0_i32_0 = arith.constant 0 : i32
    %c0_i32_1 = arith.constant 0 : i32
    return %2, %c0_i32_0 : i32, i32
  }
  func.func @transform_2(%arg0: i32, %arg1: i32) -> (i32, i32, i32) {
    %c0_i32 = arith.constant 0 : i32
    %c0_i32_0 = arith.constant 0 : i32
    %c0_i32_1 = arith.constant 0 : i32
    return %arg0, %c0_i32, %c0_i32_0 : i32, i32, i32
  }
}

</mosaic_0001>

<bundles_post_ra>
// kernel: binary_focal_loss.1
= control target key start
LH: loop header
LB: loop body
LE: loop exit
PB: predicated region body
PF: predicated region fallthrough
CT: control target
= control target key end

     0   :  { %s247_s0 = inlined_call_operand.vmem [shape: f32[16,128], index: 0, kind: input, shape index: {}]   ;;  %s248_s1 = inlined_call_operand.vmem [shape: f32[16,128], index: 1, kind: input, shape index: {}]   ;;  %s249_s2 = inlined_call_operand.hbm [shape: f32[1,1,1], index: 2, kind: output, shape index: {}]  }
   0x1   :  { %v81_v0 = vld [vmem:[%s247_s0] sm:$0xff]  ;;  %v82_v1 = vld [vmem:[%s247_s0 + $0x8] sm:$0xff] }
   0x2   :  { %v91_v2 = vand.u32 2147483647, %v81_v0  ;;  %v92_v3 = vand.u32 2147483647, %v82_v1 }
   0x3   :  { %7 = vsyncpa [#allocation4], 0  ;;  %v83_v14 = vld [vmem:[%s248_s1] sm:$0xff]  ;;  %v84_v15 = vld [vmem:[%s248_s1 + $0x8] sm:$0xff]  ;;  %v85_v17 = vmax.f32 %v81_v0, 0.0  ;;  %v86_v21 = vmax.f32 %v82_v1, 0.0 }
   0x4   :  { %v93_v4 = vsub.f32 0.0, %v91_v2  ;;  %v94_v5 = vsub.f32 0.0, %v92_v3  ;;  %v87_v18 = vmul.f32 %v83_v14, %v81_v0  ;;  %v88_v22 = vmul.f32 %v84_v15, %v82_v1  ;;  %s216_s1 = smov [#allocation3]  }
   0x5   :  { %s159_s16 = sshll.u32 %s216_s1, 4  ;;  %vm151_vm2 = vcmask 0   ;;  %s160_s16 = int_to_ptr.vmem [resolvable:$true] %s159_s16 }
   0x6   :  { %v95_v6 = vmul.f32 1.442695, %v93_v4  ;;  %v97_v7 = vmul.f32 1.442695, %v94_v5  ;;  %v89_v26 = vsub.f32 %v85_v17, %v87_v18  ;;  %v90_v29 = vsub.f32 %v86_v21, %v88_v22  ;;  %s194_s18 = scalar_lea.vmem %s160_s16, 16  ;;  %s198_s19 = scalar_lea.vmem %s160_s16, 32 }
   0x7   :  { %p195_p0 = scmp.ne.s32.totalorder %s160_s16, %s194_s18  ;;  %p199_p1 = scmp.lt.s32.totalorder %s160_s16, %s160_s16 }
   0x8   :  { %182 = vpow2.f32 %v95_v6  ;;  %p200_p2 = scmp.lt.s32.totalorder %s198_s19, %s194_s18 }
   0x9   :  { %184 = vpow2.f32 %v97_v7 }
   0xa   :  { %p201_p3 = por %p200_p2, %p199_p1 }
   0xc   :  { %p202_p4 = pnand %p201_p3, %p195_p0 }
  0x15   :  { %v183_v8 = vpop.eup %182 }
  0x16   :  { %v185_v9 = vpop.eup %184  ;;  %v99_v10 = vadd.f32 1.0, %v183_v8  ;;  %v102_v12 = vmul.f32 -0.5, %v183_v8  ;;  %v105_v19 = vand.u32 2147483647, %v183_v8 }
  0x17   :  { %v108_v11 = vadd.f32 1.0, %v185_v9  ;;  %v111_v13 = vmul.f32 -0.5, %v185_v9  ;;  %v114_v23 = vand.u32 2147483647, %v185_v9 }
  0x18   :  { %186 = vlog2.f32 %v99_v10  ;;  %v103_v16 = vadd.f32 1.0, %v102_v12  ;;  %vm106_vm0 = vcmp.lt.f32.partialorder %v105_v19, 0.0004427343 }
  0x19   :  { %188 = vlog2.f32 %v108_v11  ;;  %v112_v20 = vadd.f32 1.0, %v111_v13  ;;  %vm115_vm1 = vcmp.lt.f32.partialorder %v114_v23, 0.0004427343 }
  0x1a   :  { %v104_v24 = vmul.f32 %v183_v8, %v103_v16 }
  0x1b   :  { %v113_v27 = vmul.f32 %v185_v9, %v112_v20 }
  0x25   :  { %v187_v25 = vpop.eup %186 }
  0x26   :  { %v189_v28 = vpop.eup %188  ;;  %v101_v30 = vmul.f32 0.6931472, %v187_v25 }
  0x27   :  { %v110_v31 = vmul.f32 0.6931472, %v189_v28 }
  0x28   :  { %v107_v32 = vsel %vm106_vm0, %v104_v24, %v101_v30 }
  0x29   :  { %v116_v33 = vsel %vm115_vm1, %v113_v27, %v110_v31  ;;  %v117_v34 = vadd.f32 %v107_v32, %v89_v26 }
  0x2a   :  { %v118_v35 = vadd.f32 %v116_v33, %v90_v29 }
  0x2b   :  { %v119_v36 = vsub.f32 0.0, %v117_v34 }
  0x2c   :  { %v120_v37 = vsub.f32 0.0, %v118_v35 }
  0x2d   :  { %v121_v38 = vmul.f32 1.442695, %v119_v36 }
  0x2e   :  { %v123_v39 = vmul.f32 1.442695, %v120_v37 }
  0x2f   :  { %190 = vpow2.f32 %v121_v38 }
  0x30   :  { %192 = vpow2.f32 %v123_v39 }
  0x3c   :  { %v191_v40 = vpop.eup %190 }
  0x3d   :  { %v193_v41 = vpop.eup %192  ;;  %v125_v42 = vsub.f32 1.0, %v191_v40 }
  0x3e   :  { %v126_v43 = vsub.f32 1.0, %v193_v41 }
  0x3f   :  { %v127_v44 = vmul.f32 0.25, %v125_v42 }
  0x40   :  { %v128_v45 = vmul.f32 0.25, %v126_v43 }
  0x41   :  { %v129_v46 = vmul.f32 %v127_v44, %v125_v42 }
  0x42   :  { %v130_v47 = vmul.f32 %v128_v45, %v126_v43 }
  0x43   :  { %v131_v48 = vmul.f32 %v129_v46, %v117_v34 }
  0x44   :  { %v132_v49 = vmul.f32 %v130_v47, %v118_v35 }
  0x46   :  { %v133_v50 = vadd.f32 %v132_v49, %v131_v48 }
  0x48   :  { %141 = vadd.xlane.f32.xlu0 %v133_v50 }
  0xd1   :  { %v142_v51 = vpop.xlane.xlu0 %141 }
  0xd2   :  { %v143_v52 = vrot.slane %v142_v51, 4 }
  0xd4   :  { %v144_v53 = vadd.f32 %v143_v52, %v142_v51 }
  0xd6   :  { %v145_v54 = vrot.slane %v144_v53, 2 }
  0xd8   :  { %v146_v55 = vadd.f32 %v145_v54, %v144_v53 }
  0xda   :  { %v147_v56 = vrot.slane %v146_v55, 1 }
  0xdc   :  { %v148_v57 = vadd.f32 %v147_v56, %v146_v55 }
  0xde   :  { %179 = vpush %v148_v57 }
 0x10f   :  { %s180_s17 = spop %179 }
 0x110   :  { %v150_v58 = vstv %s180_s17 }
 0x111   :  { %152 = vst.msk [vmem:[#allocation3] sm:$0x1] %vm151_vm2, %v150_v58 }
 0x112   :  { %205 = shalt.err (!%p202_p4)
}
 0x113   :  { %162 = dma.vmem_to_hbm [thread:$0]  %s160_s16, 16, %s249_s2, [#allocation4]  }
 0x114   :  { %214 = dma.done.wait [#allocation4], 16  }
 0x115   :  { %215 = vsyncadd [#allocation4], 4294967280 }
 0x116   :  { %166 = vsyncpa [#allocation4], 1 }

</bundles_post_ra>
